<compile_context>
chip_gen: v7x
topology: tpu7x:2x2x1
jax: 0.10.0
libtpu: 0.0.40
codegen_flags: <defaults>
</compile_context>

<pallas_src>
import functools

import jax
import jax.numpy as jnp
from jax.experimental import pallas as pl
from jax.experimental.pallas import tpu as pltpu


def _z2p4_tap_matmul_kernel(x_ref, w_ref, o_ref, *, H, W, k):
    """One grid step = one image.

    x_ref: (H+2p, W+2p, Cin)    padded NHWC image (halo resident in VMEM)
    w_ref: (k*k, Cin, 4*Cout)   rotation-fused per-tap weights (grid-invariant)
    o_ref: (H*W, 4*Cout)        output rows for this image, columns (Cout, rot)
    """
    HW = H * W
    Cin = x_ref.shape[-1]
    Nc = o_ref.shape[-1]

    acc = jnp.zeros((HW, Nc), dtype=jnp.float32)
    # k*k static taps: shifted VMEM slices + accumulating MXU matmuls.
    # This replaces the old HBM im2col slab -> input HBM traffic drops ~k^2x.
    for kh in range(k):
        for kw in range(k):
            x_tap = x_ref[pl.ds(kh, H), pl.ds(kw, W), :].reshape(HW, Cin)
            w_tap = w_ref[kh * k + kw]                       # (Cin, Nc)
            acc = acc + jnp.dot(x_tap, w_tap,
                                preferred_element_type=jnp.float32)
    o_ref[...] = acc.astype(o_ref.dtype)


def z2p4_gconv2d(x_nchw, weight_oihw):
    """Forward of Z2P4GConv2d. x: (N, Cin, H, W), weight: (Cout, Cin, k, k).

    Returns (N, Cout, 4, H, W) — identical to the PyTorch module (bias unused).
    """
    N, Cin, H, W = x_nchw.shape
    Cout, Cin_w, k, k2 = weight_oihw.shape
    assert Cin_w == Cin and k == k2
    assert k % 2 == 1, "padding='same' with even kernels not handled"
    p = (k - 1) // 2
    Hp, Wp = H + 2 * p, W + 2 * p
    kk, HW, Nc = k * k, H * W, 4 * Cout

    # ---------------- glue: pure layout work, no math -----------------------
    # NCHW -> padded NHWC in a single pass (the only input-side copy left).
    x_pad = jnp.pad(jnp.transpose(x_nchw, (0, 2, 3, 1)),
                    ((0, 0), (p, p), (p, p), (0, 0)))

    # torch.rot90(W, r, [2,3]) == jnp.rot90(W, r, axes=(2,3)). Fuse the 4
    # rotations on the output-channel axis, Cout-major / rotation-minor so the
    # final output splits cleanly into (Cout, 4).
    w_rots = jnp.stack([jnp.rot90(weight_oihw, r, axes=(2, 3))
                        for r in range(4)], axis=0)          # (4, Cout, Cin, k, k)
    w_fused = jnp.transpose(w_rots, (3, 4, 2, 1, 0)).reshape(kk, Cin, Nc)

    itemsize = jnp.dtype(x_nchw.dtype).itemsize
    # Explicit VMEM budget: double-buffered in/out blocks + resident weights +
    # f32 accumulator, with slack. Capped below v7x's 64 MiB physical VMEM.
    block_bytes = (2 * Hp * Wp * Cin * itemsize      # input block (dbl-buffered)
                   + 2 * kk * Cin * Nc * itemsize    # fused weights (resident)
                   + 2 * HW * Nc * itemsize          # output block (dbl-buffered)
                   + HW * Nc * 4)                    # f32 accumulator
    vmem_limit = int(min(60 * 2 ** 20, max(4 * block_bytes, 16 * 2 ** 20)))

    kernel = functools.partial(_z2p4_tap_matmul_kernel, H=H, W=W, k=k)
    out = pl.pallas_call(
        kernel,
        out_shape=jax.ShapeDtypeStruct((N, HW, Nc), x_nchw.dtype),
        grid_spec=pltpu.PrefetchScalarGridSpec(
            num_scalar_prefetch=0,
            grid=(N,),                   # one image per step; >=2 steps keeps
                                         # both v7x TensorCores busy
            in_specs=[
                pl.BlockSpec((None, Hp, Wp, Cin), lambda n: (n, 0, 0, 0)),
                # Grid-invariant fused weights (constant index_map).
                # TODO(synk): for large Cin/Cout on v7x (64 MiB VMEM), single-
                # buffer this via pipeline_mode=pl.Buffered(1) and/or add a
                # K/Nc grid axis; at demo sizes the default is fine.
                pl.BlockSpec((kk, Cin, Nc), lambda n: (0, 0, 0)),
            ],
            out_specs=pl.BlockSpec((None, HW, Nc), lambda n: (n, 0, 0)),
        ),
        compiler_params=pltpu.CompilerParams(
            dimension_semantics=("parallel",),
            vmem_limit_bytes=vmem_limit,
        ),
        cost_estimate=pl.CostEstimate(
            flops=2 * N * HW * kk * Cin * Nc,
            transcendentals=0,
            bytes_accessed=(N * Hp * Wp * Cin + kk * Cin * Nc + N * HW * Nc)
            * itemsize,
        ),
    )(x_pad, w_fused)

    # (N, H*W, Cout*4) -> (N, Cout, 4, H, W) to match the PyTorch module.
    # TODO(synk): if a downstream consumer accepts channels-last, return
    # out.reshape(N, H, W, Cout, 4) directly and skip this HBM permute.
    return jnp.transpose(out.reshape(N, H, W, Cout, 4), (0, 3, 4, 1, 2))


def _reference(x_nchw, weight_oihw):
    """Pure-JAX reference mirroring the PyTorch forward."""
    outs = []
    for i in range(4):
        w = jnp.rot90(weight_oihw, i, axes=(2, 3))
        o = jax.lax.conv_general_dilated(
            x_nchw, w, window_strides=(1, 1), padding="SAME",
            dimension_numbers=("NCHW", "OIHW", "NCHW"))
        outs.append(o)
    return jnp.stack(outs, axis=2)


if __name__ == "__main__":
    in_channels, out_channels, kernel_size = 4, 8, 3
    N, H, W = 2, 16, 16

    key = jax.random.PRNGKey(0)
    k_x, k_w, k_b = jax.random.split(key, 3)
    x = jax.random.normal(k_x, (N, in_channels, H, W), dtype=jnp.float32)
    weight = jax.random.normal(
        k_w, (out_channels, in_channels, kernel_size, kernel_size),
        dtype=jnp.float32)
    # bias exists in the module but is not used in forward (F.conv2d(..., bias=None)).
    bias = jax.random.normal(k_b, (out_channels,), dtype=jnp.float32)  # noqa: F841

    fwd = jax.jit(z2p4_gconv2d)
    y = jax.block_until_ready(fwd(x, weight))
    y_ref = jax.block_until_ready(_reference(x, weight))

    assert y.shape == (N, out_channels, 4, H, W), y.shape
    assert jnp.allclose(y, y_ref, atol=2e-4, rtol=2e-4), float(
        jnp.max(jnp.abs(y - y_ref)))
    print("KERNEL_OK")
</pallas_src>

<mosaic_0001>
module attributes {stable_mosaic.version = 11 : i64} {
  func.func @_z2p4_tap_matmul_kernel(%arg0: i32, %arg1: memref<1x18x18x4xf32, #tpu.memory_space<vmem>>, %arg2: memref<9x4x32xf32, #tpu.memory_space<vmem>>, %arg3: memref<1x256x32xf32, #tpu.memory_space<vmem>>) attributes {dimension_semantics = [#tpu.dimension_semantics<parallel>], iteration_bounds = array<i64: 2>, scalar_prefetch = 0 : i64, scratch_operands = 0 : i64, tpu.core_type = #tpu.core_type<tc>, window_params = [{transform_indices = @transform_0, window_bounds = array<i64: 1, 18, 18, 4>}, {pipeline_mode = #tpu.pipeline_mode<synchronous>, transform_indices = @transform_1, window_bounds = array<i64: 9, 4, 32>}, {transform_indices = @transform_2, window_bounds = array<i64: 1, 256, 32>}]} {
    %cst = arith.constant 0.000000e+00 : f32
    %0 = vector.broadcast %cst : f32 to vector<256x32xf32>
    %c0 = arith.constant 0 : index
    %c0_0 = arith.constant 0 : index
    %c0_1 = arith.constant 0 : index
    %c0_2 = arith.constant 0 : index
    %1 = vector.load %arg1[%c0, %c0_0, %c0_1, %c0_2] : memref<1x18x18x4xf32, #tpu.memory_space<vmem>>, vector<1x16x16x4xf32>
    %2 = vector.shape_cast %1 : vector<1x16x16x4xf32> to vector<16x16x4xf32>
    %3 = vector.shape_cast %2 : vector<16x16x4xf32> to vector<256x4xf32>
    %c0_3 = arith.constant 0 : index
    %c0_4 = arith.constant 0 : index
    %c0_5 = arith.constant 0 : index
    %4 = vector.load %arg2[%c0_3, %c0_4, %c0_5] : memref<9x4x32xf32, #tpu.memory_space<vmem>>, vector<1x4x32xf32>
    %5 = vector.shape_cast %4 : vector<1x4x32xf32> to vector<4x32xf32>
    %cst_6 = arith.constant dense<0.000000e+00> : vector<256x32xf32>
    %6 = tpu.matmul %3, %5, %cst_6 {dimension_numbers = #tpu.dot_dimension_numbers<[1], [0], [0], [1], [0, 0, 1, 1], [], []>} : vector<256x4xf32>, vector<4x32xf32>, vector<256x32xf32> -> vector<256x32xf32>
    %7 = arith.addf %0, %6 : vector<256x32xf32>
    %c0_7 = arith.constant 0 : index
    %c0_8 = arith.constant 0 : index
    %c1 = arith.constant 1 : index
    %c0_9 = arith.constant 0 : index
    %8 = vector.load %arg1[%c0_7, %c0_8, %c1, %c0_9] : memref<1x18x18x4xf32, #tpu.memory_space<vmem>>, vector<1x16x16x4xf32>
    %9 = vector.shape_cast %8 : vector<1x16x16x4xf32> to vector<16x16x4xf32>
    %10 = vector.shape_cast %9 : vector<16x16x4xf32> to vector<256x4xf32>
    %c1_10 = arith.constant 1 : index
    %c0_11 = arith.constant 0 : index
    %c0_12 = arith.constant 0 : index
    %11 = vector.load %arg2[%c1_10, %c0_11, %c0_12] : memref<9x4x32xf32, #tpu.memory_space<vmem>>, vector<1x4x32xf32>
    %12 = vector.shape_cast %11 : vector<1x4x32xf32> to vector<4x32xf32>
    %cst_13 = arith.constant dense<0.000000e+00> : vector<256x32xf32>
    %13 = tpu.matmul %10, %12, %cst_13 {dimension_numbers = #tpu.dot_dimension_numbers<[1], [0], [0], [1], [0, 0, 1, 1], [], []>} : vector<256x4xf32>, vector<4x32xf32>, vector<256x32xf32> -> vector<256x32xf32>
    %14 = arith.addf %7, %13 : vector<256x32xf32>
    %c0_14 = arith.constant 0 : index
    %c0_15 = arith.constant 0 : index
    %c2 = arith.constant 2 : index
    %c0_16 = arith.constant 0 : index
    %15 = vector.load %arg1[%c0_14, %c0_15, %c2, %c0_16] : memref<1x18x18x4xf32, #tpu.memory_space<vmem>>, vector<1x16x16x4xf32>
    %16 = vector.shape_cast %15 : vector<1x16x16x4xf32> to vector<16x16x4xf32>
    %17 = vector.shape_cast %16 : vector<16x16x4xf32> to vector<256x4xf32>
    %c2_17 = arith.constant 2 : index
    %c0_18 = arith.constant 0 : index
    %c0_19 = arith.constant 0 : index
    %18 = vector.load %arg2[%c2_17, %c0_18, %c0_19] : memref<9x4x32xf32, #tpu.memory_space<vmem>>, vector<1x4x32xf32>
    %19 = vector.shape_cast %18 : vector<1x4x32xf32> to vector<4x32xf32>
    %cst_20 = arith.constant dense<0.000000e+00> : vector<256x32xf32>
    %20 = tpu.matmul %17, %19, %cst_20 {dimension_numbers = #tpu.dot_dimension_numbers<[1], [0], [0], [1], [0, 0, 1, 1], [], []>} : vector<256x4xf32>, vector<4x32xf32>, vector<256x32xf32> -> vector<256x32xf32>
    %21 = arith.addf %14, %20 : vector<256x32xf32>
    %c0_21 = arith.constant 0 : index
    %c1_22 = arith.constant 1 : index
    %c0_23 = arith.constant 0 : index
    %c0_24 = arith.constant 0 : index
    %22 = vector.load %arg1[%c0_21, %c1_22, %c0_23, %c0_24] : memref<1x18x18x4xf32, #tpu.memory_space<vmem>>, vector<1x16x16x4xf32>
    %23 = vector.shape_cast %22 : vector<1x16x16x4xf32> to vector<16x16x4xf32>
    %24 = vector.shape_cast %23 : vector<16x16x4xf32> to vector<256x4xf32>
    %c3 = arith.constant 3 : index
    %c0_25 = arith.constant 0 : index
    %c0_26 = arith.constant 0 : index
    %25 = vector.load %arg2[%c3, %c0_25, %c0_26] : memref<9x4x32xf32, #tpu.memory_space<vmem>>, vector<1x4x32xf32>
    %26 = vector.shape_cast %25 : vector<1x4x32xf32> to vector<4x32xf32>
    %cst_27 = arith.constant dense<0.000000e+00> : vector<256x32xf32>
    %27 = tpu.matmul %24, %26, %cst_27 {dimension_numbers = #tpu.dot_dimension_numbers<[1], [0], [0], [1], [0, 0, 1, 1], [], []>} : vector<256x4xf32>, vector<4x32xf32>, vector<256x32xf32> -> vector<256x32xf32>
    %28 = arith.addf %21, %27 : vector<256x32xf32>
    %c0_28 = arith.constant 0 : index
    %c1_29 = arith.constant 1 : index
    %c1_30 = arith.constant 1 : index
    %c0_31 = arith.constant 0 : index
    %29 = vector.load %arg1[%c0_28, %c1_29, %c1_30, %c0_31] : memref<1x18x18x4xf32, #tpu.memory_space<vmem>>, vector<1x16x16x4xf32>
    %30 = vector.shape_cast %29 : vector<1x16x16x4xf32> to vector<16x16x4xf32>
    %31 = vector.shape_cast %30 : vector<16x16x4xf32> to vector<256x4xf32>
    %c4 = arith.constant 4 : index
    %c0_32 = arith.constant 0 : index
    %c0_33 = arith.constant 0 : index
    %32 = vector.load %arg2[%c4, %c0_32, %c0_33] : memref<9x4x32xf32, #tpu.memory_space<vmem>>, vector<1x4x32xf32>
    %33 = vector.shape_cast %32 : vector<1x4x32xf32> to vector<4x32xf32>
    %cst_34 = arith.constant dense<0.000000e+00> : vector<256x32xf32>
    %34 = tpu.matmul %31, %33, %cst_34 {dimension_numbers = #tpu.dot_dimension_numbers<[1], [0], [0], [1], [0, 0, 1, 1], [], []>} : vector<256x4xf32>, vector<4x32xf32>, vector<256x32xf32> -> vector<256x32xf32>
    %35 = arith.addf %28, %34 : vector<256x32xf32>
    %c0_35 = arith.constant 0 : index
    %c1_36 = arith.constant 1 : index
    %c2_37 = arith.constant 2 : index
    %c0_38 = arith.constant 0 : index
    %36 = vector.load %arg1[%c0_35, %c1_36, %c2_37, %c0_38] : memref<1x18x18x4xf32, #tpu.memory_space<vmem>>, vector<1x16x16x4xf32>
    %37 = vector.shape_cast %36 : vector<1x16x16x4xf32> to vector<16x16x4xf32>
    %38 = vector.shape_cast %37 : vector<16x16x4xf32> to vector<256x4xf32>
    %c5 = arith.constant 5 : index
    %c0_39 = arith.constant 0 : index
    %c0_40 = arith.constant 0 : index
    %39 = vector.load %arg2[%c5, %c0_39, %c0_40] : memref<9x4x32xf32, #tpu.memory_space<vmem>>, vector<1x4x32xf32>
    %40 = vector.shape_cast %39 : vector<1x4x32xf32> to vector<4x32xf32>
    %cst_41 = arith.constant dense<0.000000e+00> : vector<256x32xf32>
    %41 = tpu.matmul %38, %40, %cst_41 {dimension_numbers = #tpu.dot_dimension_numbers<[1], [0], [0], [1], [0, 0, 1, 1], [], []>} : vector<256x4xf32>, vector<4x32xf32>, vector<256x32xf32> -> vector<256x32xf32>
    %42 = arith.addf %35, %41 : vector<256x32xf32>
    %c0_42 = arith.constant 0 : index
    %c2_43 = arith.constant 2 : index
    %c0_44 = arith.constant 0 : index
    %c0_45 = arith.constant 0 : index
    %43 = vector.load %arg1[%c0_42, %c2_43, %c0_44, %c0_45] : memref<1x18x18x4xf32, #tpu.memory_space<vmem>>, vector<1x16x16x4xf32>
    %44 = vector.shape_cast %43 : vector<1x16x16x4xf32> to vector<16x16x4xf32>
    %45 = vector.shape_cast %44 : vector<16x16x4xf32> to vector<256x4xf32>
    %c6 = arith.constant 6 : index
    %c0_46 = arith.constant 0 : index
    %c0_47 = arith.constant 0 : index
    %46 = vector.load %arg2[%c6, %c0_46, %c0_47] : memref<9x4x32xf32, #tpu.memory_space<vmem>>, vector<1x4x32xf32>
    %47 = vector.shape_cast %46 : vector<1x4x32xf32> to vector<4x32xf32>
    %cst_48 = arith.constant dense<0.000000e+00> : vector<256x32xf32>
    %48 = tpu.matmul %45, %47, %cst_48 {dimension_numbers = #tpu.dot_dimension_numbers<[1], [0], [0], [1], [0, 0, 1, 1], [], []>} : vector<256x4xf32>, vector<4x32xf32>, vector<256x32xf32> -> vector<256x32xf32>
    %49 = arith.addf %42, %48 : vector<256x32xf32>
    %c0_49 = arith.constant 0 : index
    %c2_50 = arith.constant 2 : index
    %c1_51 = arith.constant 1 : index
    %c0_52 = arith.constant 0 : index
    %50 = vector.load %arg1[%c0_49, %c2_50, %c1_51, %c0_52] : memref<1x18x18x4xf32, #tpu.memory_space<vmem>>, vector<1x16x16x4xf32>
    %51 = vector.shape_cast %50 : vector<1x16x16x4xf32> to vector<16x16x4xf32>
    %52 = vector.shape_cast %51 : vector<16x16x4xf32> to vector<256x4xf32>
    %c7 = arith.constant 7 : index
    %c0_53 = arith.constant 0 : index
    %c0_54 = arith.constant 0 : index
    %53 = vector.load %arg2[%c7, %c0_53, %c0_54] : memref<9x4x32xf32, #tpu.memory_space<vmem>>, vector<1x4x32xf32>
    %54 = vector.shape_cast %53 : vector<1x4x32xf32> to vector<4x32xf32>
    %cst_55 = arith.constant dense<0.000000e+00> : vector<256x32xf32>
    %55 = tpu.matmul %52, %54, %cst_55 {dimension_numbers = #tpu.dot_dimension_numbers<[1], [0], [0], [1], [0, 0, 1, 1], [], []>} : vector<256x4xf32>, vector<4x32xf32>, vector<256x32xf32> -> vector<256x32xf32>
    %56 = arith.addf %49, %55 : vector<256x32xf32>
    %c0_56 = arith.constant 0 : index
    %c2_57 = arith.constant 2 : index
    %c2_58 = arith.constant 2 : index
    %c0_59 = arith.constant 0 : index
    %57 = vector.load %arg1[%c0_56, %c2_57, %c2_58, %c0_59] : memref<1x18x18x4xf32, #tpu.memory_space<vmem>>, vector<1x16x16x4xf32>
    %58 = vector.shape_cast %57 : vector<1x16x16x4xf32> to vector<16x16x4xf32>
    %59 = vector.shape_cast %58 : vector<16x16x4xf32> to vector<256x4xf32>
    %c8 = arith.constant 8 : index
    %c0_60 = arith.constant 0 : index
    %c0_61 = arith.constant 0 : index
    %60 = vector.load %arg2[%c8, %c0_60, %c0_61] : memref<9x4x32xf32, #tpu.memory_space<vmem>>, vector<1x4x32xf32>
    %61 = vector.shape_cast %60 : vector<1x4x32xf32> to vector<4x32xf32>
    %cst_62 = arith.constant dense<0.000000e+00> : vector<256x32xf32>
    %62 = tpu.matmul %59, %61, %cst_62 {dimension_numbers = #tpu.dot_dimension_numbers<[1], [0], [0], [1], [0, 0, 1, 1], [], []>} : vector<256x4xf32>, vector<4x32xf32>, vector<256x32xf32> -> vector<256x32xf32>
    %63 = arith.addf %56, %62 : vector<256x32xf32>
    %c0_63 = arith.constant 0 : index
    %c0_64 = arith.constant 0 : index
    %c0_65 = arith.constant 0 : index
    %64 = vector.load %arg3[%c0_63, %c0_64, %c0_65] : memref<1x256x32xf32, #tpu.memory_space<vmem>>, vector<1x256x32xf32>
    %65 = vector.shape_cast %64 : vector<1x256x32xf32> to vector<256x32xf32>
    %66 = vector.shape_cast %63 : vector<256x32xf32> to vector<1x256x32xf32>
    tpu.vector_store %arg3[%c0_63, %c0_64, %c0_65], %66 {strides = array<i32>} : memref<1x256x32xf32, #tpu.memory_space<vmem>>, vector<1x256x32xf32>,
    return
  }
  func.func @transform_0(%arg0: i32) -> (i32, i32, i32, i32) {
    %c0_i32 = arith.constant 0 : i32
    %c0_i32_0 = arith.constant 0 : i32
    %c0_i32_1 = arith.constant 0 : i32
    %c0_i32_2 = arith.constant 0 : i32
    return %arg0, %c0_i32, %c0_i32_0, %c0_i32_1 : i32, i32, i32, i32
  }
  func.func @transform_1(%arg0: i32) -> (i32, i32, i32) {
    %c0_i32 = arith.constant 0 : i32
    %c0_i32_0 = arith.constant 0 : i32
    %c0_i32_1 = arith.constant 0 : i32
    %c0_i32_2 = arith.constant 0 : i32
    return %c0_i32, %c0_i32_0, %c0_i32_1 : i32, i32, i32
  }
  func.func @transform_2(%arg0: i32) -> (i32, i32, i32) {
    %c0_i32 = arith.constant 0 : i32
    %c0_i32_0 = arith.constant 0 : i32
    %c0_i32_1 = arith.constant 0 : i32
    return %arg0, %c0_i32, %c0_i32_0 : i32, i32, i32
  }
}

</mosaic_0001>

<bundles_post_ra>
// kernel: z2p4_gconv2d.1
= control target key start
LH: loop header
LB: loop body
LE: loop exit
PB: predicated region body
PF: predicated region fallthrough
CT: control target
= control target key end

     0   :  { %s5226_s9 = smov 0   ;;  %s6240_s0 = inlined_call_operand.vmem [shape: f32[2,18,18,4], index: 0, kind: input, shape index: {}]   ;;  %s6241_s1 = inlined_call_operand.vmem [shape: f32[9,4,32], index: 1, kind: input, shape index: {}]   ;;  %s6242_s2 = inlined_call_operand.vmem [shape: f32[2,256,32], index: 2, kind: output, shape index: {}]  }
   0x1 LB: > { %s3681_s10 = sadd.s32 4294967295, %s5209_s9   ;;  %p3685_p0 = scmp.ge.s32.totalorder %s5209_s9, 1  ;;  %s5209_s9 = sphi %s5226_s9, %s12_s9  }
   0x2   : > { %p112_p1 = scmp.lt.s32.totalorder %s5209_s9, 3 }
   0x4   : > { %p113_p2 = pnand %p3685_p0, %p112_p1 }
   0x6   : > { %116 = sbr.rel (%p113_p2) target bundleno = 521 (0x209), region = 28 }
   0xd   : > { %v3689_v0 = vld [vmem:[%s6241_s1 + $0x4] sm:$0xf]  ;;  %vm308_vm0 = vcmask 1043456   ;;  %v5240_v1 = vld [vmem:[%s6241_s1 + $0x10] sm:$0xf]  ;;  %p134_p3 = scmp.lt.s32.totalorder %s3681_s10, 1 }
   0xe   : > { %4486 = vmatprep.subr.msk.mxu1 %vm308_vm0, %v3689_v0  ;;  %4686 = vmatprep.subr.msk.mxu0 %vm308_vm0, %v5240_v1  ;;  %v176_v2 = vld [vmem:[%s6241_s1] sm:$0xf]  ;;  %v3954_v3 = vld [vmem:[%s6241_s1 + $0x14] sm:$0xf]  ;;  %vm211_vm1 = vcmask 31744   ;;  %vm3593_vm2 = vcmask 261120  }
   0xf   : > { %4487 = vmatpush3.msk.msra.mxu1 %vm308_vm0, %v3689_v0  ;;  %4687 = vmatpush3.msk.msra.mxu0 %vm308_vm0, %v5240_v1  ;;  %s6353_s10 = smov (!%p134_p3, %s3681_s10), 1  ;;  %v4020_v9 = vld [vmem:[%s6241_s1 + $0x18] sm:$0xf]  ;;  %v5281_v10 = vld [vmem:[%s6241_s1 + $0x8] sm:$0xf] }
  0x10   : > { %4536 = vmatprep.subr.msk.mxu1 %vm308_vm0, %v176_v2  ;;  %4736 = vmatprep.subr.msk.mxu0 %vm308_vm0, %v3954_v3  ;;  %s5194_s19 = smul.u32 432, %s6353_s10  ;;  %v5400_v28 = vld [vmem:[%s6241_s1 + $0x1c] sm:$0xf]  ;;  %v5563_v61 = vld [vmem:[%s6241_s1 + $0xc] sm:$0xf]  ;;  %s4188_s5 = sshll.u32 %s6353_s10, 8 }
  0x11   : > { %s6171_s8 = scalar_lea.vmem %s6242_s2, %s4188_s5 }
  0x12   : > { %s5262_s22 = scalar_lea.vmem %s6240_s0, %s5194_s19 }
  0x13   : > { %v177_v4 = vld [vmem:[%s5262_s22 + $0x1] sm:$0xff]  ;;  %v3856_v5 = vld [vmem:[%s5262_s22 + $0x19] sm:$0xff]  ;;  %v178_v6 = vld [vmem:[%s5262_s22 + $0x9] sm:$0xff] }
  0x14   : > { %4488 = vmatprep.mubr.msk.f32.mxu1 %vm211_vm1, %v177_v4  ;;  %4688 = vmatprep.mubr.msk.f32.mxu0 %vm211_vm1, %v3856_v5  ;;  %v3857_v7 = vld [vmem:[%s5262_s22 + $0x21] sm:$0xff]  ;;  %v5271_v8 = vld [vmem:[%s5262_s22 + $0x31] sm:$0xff]  ;;  %v5286_v11 = vld [vmem:[%s5262_s22 + $0x39] sm:$0xff] }
  0x15   : > { %4489 = vmatmul.mubr.msk.f32.vlgmr.msra.gmra.mrb[0].mxu1 %vm211_vm1, %v178_v6  ;;  %4689 = vmatmul.mubr.msk.f32.vlgmr.msra.gmra.mrb[0].mxu0 %vm211_vm1, %v3857_v7  ;;  %v5292_v12 = vld [vmem:[%s5262_s22 + $0x49] sm:$0xff]  ;;  %v5305_v13 = vld [vmem:[%s5262_s22 + $0x51] sm:$0xff]  ;;  %v5308_v14 = vld [vmem:[%s5262_s22 + $0x61] sm:$0xff] }
  0x16   : > { %4537 = vmatpush3.msk.msra.mxu1 %vm308_vm0, %v176_v2  ;;  %4737 = vmatpush3.msk.msra.mxu0 %vm308_vm0, %v3954_v3  ;;  %v5319_v15 = vld [vmem:[%s5262_s22 + $0x69] sm:$0xff]  ;;  %v5322_v16 = vld [vmem:[%s5262_s22 + $0x79] sm:$0xff]  ;;  %v5333_v17 = vld [vmem:[%s5262_s22 + $0x81] sm:$0xff] }
  0x17   : > { %4491 = vmatprep.mubr.msk.f32.mxu1 %vm211_vm1, %v3856_v5  ;;  %4691 = vmatprep.mubr.msk.f32.mxu0 %vm211_vm1, %v5271_v8  ;;  %v5336_v18 = vld [vmem:[%s5262_s22 + $0x91] sm:$0xff]  ;;  %v5347_v19 = vld [vmem:[%s5262_s22 + $0x99] sm:$0xff]  ;;  %v5350_v20 = vld [vmem:[%s5262_s22 + $0xa9] sm:$0xff] }
  0x18   : > { %4786 = vmatprep.subr.msk.mxu0 %vm308_vm0, %v4020_v9  ;;  %4586 = vmatprep.subr.msk.mxu1 %vm308_vm0, %v5281_v10  ;;  %v5361_v21 = vld [vmem:[%s5262_s22 + $0xb1] sm:$0xff]  ;;  %v5364_v22 = vld [vmem:[%s5262_s22 + $0xc1] sm:$0xff]  ;;  %v5375_v23 = vld [vmem:[%s5262_s22 + $0xc9] sm:$0xff] }
  0x19   : > { %4492 = vmatmul.mubr.msk.f32.gmra.mrb[2].mxu1 %vm211_vm1, %v3857_v7  ;;  %4692 = vmatmul.mubr.msk.f32.gmra.mrb[2].mxu0 %vm211_vm1, %v5286_v11  ;;  %v5378_v24 = vld [vmem:[%s5262_s22 + $0x1a] sm:$0xff]  ;;  %v5389_v25 = vld [vmem:[%s5262_s22 + $0x22] sm:$0xff]  ;;  %v5395_v27 = vld [vmem:[%s5262_s22 + $0x32] sm:$0xff] }
  0x1a   : > { %4494 = vmatprep.mubr.msk.f32.mxu1 %vm211_vm1, %v5271_v8  ;;  %4694 = vmatprep.mubr.msk.f32.mxu0 %vm211_vm1, %v5292_v12  ;;  %v5392_v26 = vld [vmem:[%s5262_s22 + $0xd9] sm:$0xff]  ;;  %v5410_v29 = vld [vmem:[%s5262_s22 + $0xe1] sm:$0xff]  ;;  %v5418_v31 = vld [vmem:[%s5262_s22 + $0xf1] sm:$0xff] }
  0x1b   : > { %6288 = vst [vmem:[#allocation2_spill] sm:$0xff] %v5410_v29  ;;  %v5413_v30 = vld [vmem:[%s5262_s22 + $0x3a] sm:$0xff]  ;;  %6289 = vst [vmem:[#allocation3_spill] sm:$0xff] %v5418_v31  ;;  %v5421_v32 = vld [vmem:[%s5262_s22 + $0x4a] sm:$0xff] }
  0x1c   : > { %v5434_v33 = vld [vmem:[%s5262_s22 + $0xf9] sm:$0xff]  ;;  %v5440_v35 = vld [vmem:[%s5262_s22 + $0x109] sm:$0xff]  ;;  %v5454_v37 = vld [vmem:[%s5262_s22 + $0x111] sm:$0xff] }
  0x1d   : > { %4495 = vmatmul.mubr.msk.f32.gmra.mrb[4].mxu1 %vm211_vm1, %v5286_v11  ;;  %4695 = vmatmul.mubr.msk.f32.gmra.mrb[4].mxu0 %vm211_vm1, %v5305_v13  ;;  %6290 = vst [vmem:[#allocation4_spill] sm:$0xff] %v5434_v33  ;;  %v5437_v34 = vld [vmem:[%s5262_s22 + $0x52] sm:$0xff]  ;;  %6291 = vst [vmem:[#allocation5_spill] sm:$0xff] %v5440_v35  ;;  %v5443_v36 = vld [vmem:[%s5262_s22 + $0x62] sm:$0xff] }
  0x1e   : > { %4497 = vmatprep.mubr.msk.f32.mxu1 %vm211_vm1, %v5292_v12  ;;  %4697 = vmatprep.mubr.msk.f32.mxu0 %vm211_vm1, %v5308_v14  ;;  %6292 = vst [vmem:[#allocation6_spill] sm:$0xff] %v5454_v37  ;;  %v5457_v38 = vld [vmem:[%s5262_s22 + $0x6a] sm:$0xff]  ;;  %v5460_v39 = vld [vmem:[%s5262_s22 + $0x121] sm:$0xff]  ;;  %v5480_v43 = vld [vmem:[%s5262_s22 + $0x139] sm:$0xff] }
  0x1f   : > { %6293 = vst [vmem:[#allocation7_spill] sm:$0xff] %v5460_v39  ;;  %v5463_v40 = vld [vmem:[%s5262_s22 + $0x7a] sm:$0xff]  ;;  %v5474_v41 = vld [vmem:[%s5262_s22 + $0x129] sm:$0xff]  ;;  %6295 = vst [vmem:[#allocation9_spill] sm:$0xff] %v5480_v43 }
  0x20   : > { %6294 = vst [vmem:[#allocation8_spill] sm:$0xff] %v5474_v41  ;;  %v5477_v42 = vld [vmem:[%s5262_s22 + $0x82] sm:$0xff]  ;;  %v5483_v44 = vld [vmem:[%s5262_s22 + $0x92] sm:$0xff]  ;;  %v5497_v46 = vld [vmem:[%s5262_s22 + $0x9a] sm:$0xff] }
  0x21   : > { %4498 = vmatmul.mubr.msk.f32.gmra.mrb[6].mxu1 %vm211_vm1, %v5305_v13  ;;  %4698 = vmatmul.mubr.msk.f32.gmra.mrb[6].mxu0 %vm211_vm1, %v5319_v15  ;;  %v5494_v45 = vld [vmem:[%s5262_s22 + $0x141] sm:$0xff]  ;;  %v5500_v47 = vld [vmem:[%s5262_s22 + $0x151] sm:$0xff]  ;;  %v5514_v49 = vld [vmem:[%s5262_s22 + $0x159] sm:$0xff] }
  0x22   : > { %4500 = vmatprep.mubr.msk.f32.mxu1 %vm211_vm1, %v5308_v14  ;;  %4700 = vmatprep.mubr.msk.f32.mxu0 %vm211_vm1, %v5322_v16  ;;  %6296 = vst [vmem:[#allocation10_spill] sm:$0xff] %v5494_v45  ;;  %6297 = vst [vmem:[#allocation11_spill] sm:$0xff] %v5500_v47  ;;  %v5503_v48 = vld [vmem:[%s5262_s22 + $0xaa] sm:$0xff]  ;;  %v5517_v50 = vld [vmem:[%s5262_s22 + $0xb2] sm:$0xff] }
  0x23   : > { %6298 = vst [vmem:[#allocation12_spill] sm:$0xff] %v5514_v49  ;;  %v5520_v51 = vld [vmem:[%s5262_s22 + $0x169] sm:$0xff]  ;;  %v5534_v53 = vld [vmem:[%s5262_s22 + $0x171] sm:$0xff]  ;;  %v144_v55 = vld [vmem:[%s5262_s22] sm:$0xff] }
  0x24   : > { %6299 = vst [vmem:[#allocation13_spill] sm:$0xff] %v5520_v51  ;;  %v5523_v52 = vld [vmem:[%s5262_s22 + $0xc2] sm:$0xff]  ;;  %6300 = vst [vmem:[#allocation14_spill] sm:$0xff] %v5534_v53  ;;  %v5537_v54 = vld [vmem:[%s5262_s22 + $0xca] sm:$0xff] }
  0x25   : > { %4501 = vmatmul.mubr.msk.f32.gmra.mrb[8].mxu1 %vm211_vm1, %v5319_v15  ;;  %4701 = vmatmul.mubr.msk.f32.gmra.mrb[8].mxu0 %vm211_vm1, %v5333_v17  ;;  %v5541_v56 = vld [vmem:[%s5262_s22 + $0xda] sm:$0xff]  ;;  %v145_v57 = vld [vmem:[%s5262_s22 + $0x8] sm:$0xff]  ;;  %v5558_v60 = vld [vmem:[%s5262_s22 + $0xf2] sm:$0xff] }
  0x26   : > { %4503 = vmatprep.mubr.msk.f32.mxu1 %vm211_vm1, %v5322_v16  ;;  %4703 = vmatprep.mubr.msk.f32.mxu0 %vm211_vm1, %v5336_v18  ;;  %v5552_v58 = vld [vmem:[%s5262_s22 + $0xe2] sm:$0xff]  ;;  %v5555_v59 = vld [vmem:[%s5262_s22 + $0x18] sm:$0xff]  ;;  %v5581_v0 = vld [vmem:[%s5262_s22 + $0x30] sm:$0xff] }
  0x27   : > { %6301 = vst [vmem:[#allocation15_spill] sm:$0xff] %v5555_v59  ;;  %v5573_v62 = vld [vmem:[%s5262_s22 + $0x20] sm:$0xff]  ;;  %6303 = vst [vmem:[#allocation17_spill] sm:$0xff] %v5581_v0  ;;  %v5584_v2 = vld [vmem:[%s5262_s22 + $0x10a] sm:$0xff] }
  0x28   : > { %6302 = vst [vmem:[#allocation16_spill] sm:$0xff] %v5573_v62  ;;  %v5576_v63 = vld [vmem:[%s5262_s22 + $0xfa] sm:$0xff]  ;;  %v5600_v4 = vld [vmem:[%s5262_s22 + $0x112] sm:$0xff]  ;;  %v5603_v5 = vld [vmem:[%s5262_s22 + $0x48] sm:$0xff] }
  0x29   : > { %4504 = vmatmul.mubr.msk.f32.gmra.mrb[10].mxu1 %vm211_vm1, %v5333_v17  ;;  %4704 = vmatmul.mubr.msk.f32.gmra.mrb[10].mxu0 %vm211_vm1, %v5347_v19  ;;  %v5597_v3 = vld [vmem:[%s5262_s22 + $0x38] sm:$0xff]  ;;  %6305 = vst [vmem:[#allocation19_spill] sm:$0xff] %v5603_v5  ;;  %v5606_v6 = vld [vmem:[%s5262_s22 + $0x122] sm:$0xff]  ;;  %v5617_v7 = vld [vmem:[%s5262_s22 + $0x50] sm:$0xff] }
  0x2a   : > { %4506 = vmatprep.mubr.msk.f32.mxu1 %vm211_vm1, %v5336_v18  ;;  %4706 = vmatprep.mubr.msk.f32.mxu0 %vm211_vm1, %v5350_v20  ;;  %6304 = vst [vmem:[#allocation18_spill] sm:$0xff] %v5597_v3  ;;  %6306 = vst [vmem:[#allocation20_spill] sm:$0xff] %v5617_v7 }
  0x2d   : > { %4507 = vmatmul.mubr.msk.f32.gmra.mrb[12].mxu1 %vm211_vm1, %v5347_v19  ;;  %4707 = vmatmul.mubr.msk.f32.gmra.mrb[12].mxu0 %vm211_vm1, %v5361_v21 }
  0x2e   : > { %4509 = vmatprep.mubr.msk.f32.mxu1 %vm211_vm1, %v5350_v20  ;;  %4709 = vmatprep.mubr.msk.f32.mxu0 %vm211_vm1, %v5364_v22 }
  0x31   : > { %4510 = vmatmul.mubr.msk.f32.gmra.mrb[14].mxu1 %vm211_vm1, %v5361_v21  ;;  %4710 = vmatmul.mubr.msk.f32.gmra.mrb[14].mxu0 %vm211_vm1, %v5375_v23 }
  0x32   : > { %4512 = vmatprep.mubr.msk.f32.mxu1 %vm211_vm1, %v5364_v22  ;;  %4738 = vmatprep.mubr.msk.f32.mxu0 %vm211_vm1, %v5378_v24 }
  0x35   : > { %4513 = vmatmul.mubr.msk.f32.gmra.mrb[16].mxu1 %vm211_vm1, %v5375_v23  ;;  %4739 = vmatmul.mubr.msk.f32.vlgmr.msra.gmra.mrb[0].mxu0 %vm211_vm1, %v5389_v25 }
  0x36   : > { %4787 = vmatpush3.msk.msra.mxu0 %vm308_vm0, %v4020_v9  ;;  %4515 = vmatprep.mubr.msk.f32.mxu1 %vm211_vm1, %v5392_v26  ;;  %v5620_v9 = vld [vmem:[%s5262_s22 + $0x12a] sm:$0xff] }
  0x37   : > { %4741 = vmatprep.mubr.msk.f32.mxu0 %vm211_vm1, %v5395_v27  ;;  %4836 = vmatprep.subr.msk.mxu0 %vm308_vm0, %v5400_v28 }
  0x39   : > { %4516 = vmatmul.mubr.msk.f32.gmra.mrb[18].mxu1 %vm211_vm1, %v5410_v29  ;;  %4742 = vmatmul.mubr.msk.f32.gmra.mrb[2].mxu0 %vm211_vm1, %v5413_v30  ;;  %v5717_v29 = vld [vmem:[%s5262_s22 + $0xd8] sm:$0xff] }
  0x3a   : > { %4518 = vmatprep.mubr.msk.f32.mxu1 %vm211_vm1, %v5418_v31  ;;  %4744 = vmatprep.mubr.msk.f32.mxu0 %vm211_vm1, %v5421_v32  ;;  %v5700_v31 = vld [vmem:[%s5262_s22 + $0x18a] sm:$0xff] }
  0x3b   : > { %6317 = vst [vmem:[#allocation31_spill] sm:$0xff] %v5700_v31 }
  0x3d   : > { %4519 = vmatmul.mubr.msk.f32.gmra.mrb[20].mxu1 %vm211_vm1, %v5434_v33  ;;  %4745 = vmatmul.mubr.msk.f32.gmra.mrb[4].mxu0 %vm211_vm1, %v5437_v34  ;;  %v5686_v33 = vld [vmem:[%s5262_s22 + $0x182] sm:$0xff] }
  0x3e   : > { %4521 = vmatprep.mubr.msk.f32.mxu1 %vm211_vm1, %v5440_v35  ;;  %4747 = vmatprep.mubr.msk.f32.mxu0 %vm211_vm1, %v5443_v36  ;;  %v5683_v35 = vld [vmem:[%s5262_s22 + $0xa8] sm:$0xff]  ;;  %6315 = vst [vmem:[#allocation29_spill] sm:$0xff] %v5686_v33 }
  0x3f   : > { %6314 = vst [vmem:[#allocation28_spill] sm:$0xff] %v5683_v35 }
  0x41   : > { %4522 = vmatmul.mubr.msk.f32.gmra.mrb[22].mxu1 %vm211_vm1, %v5454_v37  ;;  %4748 = vmatmul.mubr.msk.f32.gmra.mrb[6].mxu0 %vm211_vm1, %v5457_v38  ;;  %v5680_v37 = vld [vmem:[%s5262_s22 + $0x172] sm:$0xff] }
  0x42   : > { %4524 = vmatprep.mubr.msk.f32.mxu1 %vm211_vm1, %v5460_v39  ;;  %4750 = vmatprep.mubr.msk.f32.mxu0 %vm211_vm1, %v5463_v40  ;;  %v5677_v39 = vld [vmem:[%s5262_s22 + $0x98] sm:$0xff]  ;;  %6313 = vst [vmem:[#allocation27_spill] sm:$0xff] %v5680_v37 }
  0x43   : > { %6312 = vst [vmem:[#allocation26_spill] sm:$0xff] %v5677_v39 }
  0x45   : > { %4525 = vmatmul.mubr.msk.f32.gmra.mrb[24].mxu1 %vm211_vm1, %v5474_v41  ;;  %4751 = vmatmul.mubr.msk.f32.gmra.mrb[8].mxu0 %vm211_vm1, %v5477_v42  ;;  %v5666_v41 = vld [vmem:[%s5262_s22 + $0x16a] sm:$0xff] }
  0x46   : > { %4527 = vmatprep.mubr.msk.f32.mxu1 %vm211_vm1, %v5480_v43  ;;  %4753 = vmatprep.mubr.msk.f32.mxu0 %vm211_vm1, %v5483_v44  ;;  %v5663_v43 = vld [vmem:[%s5262_s22 + $0x90] sm:$0xff] }
  0x47   : > { %6311 = vst [vmem:[#allocation25_spill] sm:$0xff] %v5663_v43 }
  0x49   : > { %4528 = vmatmul.mubr.msk.f32.gmra.mrb[26].mxu1 %vm211_vm1, %v5494_v45  ;;  %4754 = vmatmul.mubr.msk.f32.gmra.mrb[10].mxu0 %vm211_vm1, %v5497_v46  ;;  %v5660_v45 = vld [vmem:[%s5262_s22 + $0x15a] sm:$0xff] }
  0x4a   : > { %4530 = vmatprep.mubr.msk.f32.mxu1 %vm211_vm1, %v5500_v47  ;;  %4756 = vmatprep.mubr.msk.f32.mxu0 %vm211_vm1, %v5503_v48  ;;  %v5657_v47 = vld [vmem:[%s5262_s22 + $0x80] sm:$0xff] }
  0x4b   : > { %6310 = vst [vmem:[#allocation24_spill] sm:$0xff] %v5657_v47 }
  0x4d   : > { %4531 = vmatmul.mubr.msk.f32.gmra.mrb[28].mxu1 %vm211_vm1, %v5514_v49  ;;  %4757 = vmatmul.mubr.msk.f32.gmra.mrb[12].mxu0 %vm211_vm1, %v5517_v50  ;;  %v5646_v49 = vld [vmem:[%s5262_s22 + $0x152] sm:$0xff] }
  0x4e   : > { %4533 = vmatprep.mubr.msk.f32.mxu1 %vm211_vm1, %v5520_v51  ;;  %4759 = vmatprep.mubr.msk.f32.mxu0 %vm211_vm1, %v5523_v52  ;;  %v5643_v51 = vld [vmem:[%s5262_s22 + $0x78] sm:$0xff] }
  0x4f   : > { %6309 = vst [vmem:[#allocation23_spill] sm:$0xff] %v5643_v51 }
  0x51   : > { %4534 = vmatmul.mubr.msk.f32.gmra.mrb[30].mxu1 %vm211_vm1, %v5534_v53  ;;  %4760 = vmatmul.mubr.msk.f32.gmra.mrb[14].mxu0 %vm211_vm1, %v5537_v54  ;;  %v5640_v53 = vld [vmem:[%s5262_s22 + $0x142] sm:$0xff] }
  0x52   : > { %4538 = vmatprep.mubr.msk.f32.mxu1 %vm211_vm1, %v144_v55  ;;  %4762 = vmatprep.mubr.msk.f32.mxu0 %vm211_vm1, %v5541_v56  ;;  %v5626_v55 = vld [vmem:[%s5262_s22 + $0x13a] sm:$0xff] }
  0x55   : > { %4539 = vmatmul.mubr.msk.f32.vlgmr.msra.gmra.mrb[0].mxu1 %vm211_vm1, %v145_v57  ;;  %4763 = vmatmul.mubr.msk.f32.gmra.mrb[16].mxu0 %vm211_vm1, %v5552_v58  ;;  %v5637_v57 = vld [vmem:[%s5262_s22 + $0x68] sm:$0xff] }
  0x56   : > { %4587 = vmatpush3.msk.msra.mxu1 %vm308_vm0, %v5281_v10  ;;  %4541 = vmatprep.mubr.msk.f32.mxu1 %vm211_vm1, %v5555_v59  ;;  %v5623_v10 = vld [vmem:[%s5262_s22 + $0x60] sm:$0xff]  ;;  %6308 = vst [vmem:[#allocation22_spill] sm:$0xff] %v5637_v57 }
  0x57   : > { %4765 = vmatprep.mubr.msk.f32.mxu0 %vm211_vm1, %v5558_v60  ;;  %4636 = vmatprep.subr.msk.mxu1 %vm308_vm0, %v5563_v61  ;;  %6307 = vst [vmem:[#allocation21_spill] sm:$0xff] %v5623_v10  ;;  %v5703_v59 = vld [vmem:[%s5262_s22 + $0xc0] sm:$0xff] }
  0x59   : > { %4542 = vmatmul.mubr.msk.f32.gmra.mrb[2].mxu1 %vm211_vm1, %v5573_v62  ;;  %4766 = vmatmul.mubr.msk.f32.gmra.mrb[18].mxu0 %vm211_vm1, %v5576_v63  ;;  %v5697_v62 = vld [vmem:[%s5262_s22 + $0xb0] sm:$0xff] }
  0x5a   : > { %4544 = vmatprep.mubr.msk.f32.mxu1 %vm211_vm1, %v5581_v0  ;;  %4768 = vmatprep.mubr.msk.f32.mxu0 %vm211_vm1, %v5584_v2  ;;  %6316 = vst [vmem:[#allocation30_spill] sm:$0xff] %v5697_v62 }
  0x5d   : > { %4545 = vmatmul.mubr.msk.f32.gmra.mrb[4].mxu1 %vm211_vm1, %v5597_v3  ;;  %4769 = vmatmul.mubr.msk.f32.gmra.mrb[20].mxu0 %vm211_vm1, %v5600_v4 }
  0x5e   : > { %4547 = vmatprep.mubr.msk.f32.mxu1 %vm211_vm1, %v5603_v5  ;;  %4771 = vmatprep.mubr.msk.f32.mxu0 %vm211_vm1, %v5606_v6 }
  0x61   : > { %4548 = vmatmul.mubr.msk.f32.gmra.mrb[6].mxu1 %vm211_vm1, %v5617_v7  ;;  %4772 = vmatmul.mubr.msk.f32.gmra.mrb[22].mxu0 %vm211_vm1, %v5620_v9 }
  0x62   : > { %4550 = vmatprep.mubr.msk.f32.mxu1 %vm211_vm1, %v5623_v10  ;;  %4774 = vmatprep.mubr.msk.f32.mxu0 %vm211_vm1, %v5626_v55 }
  0x65   : > { %4551 = vmatmul.mubr.msk.f32.gmra.mrb[8].mxu1 %vm211_vm1, %v5637_v57  ;;  %4775 = vmatmul.mubr.msk.f32.gmra.mrb[24].mxu0 %vm211_vm1, %v5640_v53 }
  0x66   : > { %4553 = vmatprep.mubr.msk.f32.mxu1 %vm211_vm1, %v5643_v51  ;;  %4777 = vmatprep.mubr.msk.f32.mxu0 %vm211_vm1, %v5646_v49 }
  0x69   : > { %4554 = vmatmul.mubr.msk.f32.gmra.mrb[10].mxu1 %vm211_vm1, %v5657_v47  ;;  %4778 = vmatmul.mubr.msk.f32.gmra.mrb[26].mxu0 %vm211_vm1, %v5660_v45 }
  0x6a   : > { %4556 = vmatprep.mubr.msk.f32.mxu1 %vm211_vm1, %v5663_v43  ;;  %4780 = vmatprep.mubr.msk.f32.mxu0 %vm211_vm1, %v5666_v41 }
  0x6d   : > { %4557 = vmatmul.mubr.msk.f32.gmra.mrb[12].mxu1 %vm211_vm1, %v5677_v39  ;;  %4781 = vmatmul.mubr.msk.f32.gmra.mrb[28].mxu0 %vm211_vm1, %v5680_v37  ;;  %v5722_v37 = vld [vmem:[%s6241_s1 + $0x20] sm:$0xf] }
  0x6e   : > { %4559 = vmatprep.mubr.msk.f32.mxu1 %vm211_vm1, %v5683_v35  ;;  %4783 = vmatprep.mubr.msk.f32.mxu0 %vm211_vm1, %v5686_v33  ;;  %v5714_v33 = vld [vmem:[%s5262_s22 + $0xc8] sm:$0xff] }
  0x6f   : > { %6318 = vst [vmem:[#allocation32_spill] sm:$0xff] %v5714_v33 }
  0x71   : > { %4560 = vmatmul.mubr.msk.f32.gmra.mrb[14].mxu1 %vm211_vm1, %v5697_v62  ;;  %4784 = vmatmul.mubr.msk.f32.gmra.mrb[30].mxu0 %vm211_vm1, %v5700_v31  ;;  %v5733_v31 = vld [vmem:[%s5262_s22 + $0xe0] sm:$0xff] }
  0x72   : > { %4562 = vmatprep.mubr.msk.f32.mxu1 %vm211_vm1, %v5703_v59  ;;  %4788 = vmatprep.mubr.msk.f32.mxu0 %vm211_vm1, %v5581_v0  ;;  %v5738_v0 = vld [vmem:[%s5262_s22 + $0xf0] sm:$0xff] }
  0x75   : > { %4563 = vmatmul.mubr.msk.f32.gmra.mrb[16].mxu1 %vm211_vm1, %v5714_v33  ;;  %4789 = vmatmul.mubr.msk.f32.vlgmr.msra.gmra.mrb[0].mxu0 %vm211_vm1, %v5597_v3  ;;  %v861_v3 = vld [vmem:[%s5262_s22 + $0x2] sm:$0xff] }
  0x76   : > { %4837 = vmatpush3.msk.msra.mxu0 %vm308_vm0, %v5400_v28  ;;  %4565 = vmatprep.mubr.msk.f32.mxu1 %vm211_vm1, %v5717_v29  ;;  %v5751_v28 = vld [vmem:[%s5262_s22 + $0xf8] sm:$0xff] }
  0x77   : > { %4791 = vmatprep.mubr.msk.f32.mxu0 %vm211_vm1, %v5603_v5  ;;  %4886 = vmatprep.subr.msk.mxu0 %vm308_vm0, %v5722_v37  ;;  %v5754_v5 = vld [vmem:[%s5262_s22 + $0x108] sm:$0xff] }
  0x79   : > { %4566 = vmatmul.mubr.msk.f32.gmra.mrb[18].mxu1 %vm211_vm1, %v5733_v31  ;;  %4792 = vmatmul.mubr.msk.f32.gmra.mrb[2].mxu0 %vm211_vm1, %v5617_v7  ;;  %v5765_v7 = vld [vmem:[%s5262_s22 + $0x110] sm:$0xff] }
  0x7a   : > { %4568 = vmatprep.mubr.msk.f32.mxu1 %vm211_vm1, %v5738_v0  ;;  %4794 = vmatprep.mubr.msk.f32.mxu0 %vm211_vm1, %v5623_v10  ;;  %v5768_v10 = vld [vmem:[%s5262_s22 + $0x120] sm:$0xff] }
  0x7d   : > { %4569 = vmatmul.mubr.msk.f32.gmra.mrb[20].mxu1 %vm211_vm1, %v5751_v28  ;;  %4795 = vmatmul.mubr.msk.f32.gmra.mrb[4].mxu0 %vm211_vm1, %v5637_v57  ;;  %v5779_v57 = vld [vmem:[%s5262_s22 + $0x128] sm:$0xff] }
  0x7e   : > { %4571 = vmatprep.mubr.msk.f32.mxu1 %vm211_vm1, %v5754_v5  ;;  %4797 = vmatprep.mubr.msk.f32.mxu0 %vm211_vm1, %v5643_v51  ;;  %v5782_v51 = vld [vmem:[%s5262_s22 + $0x138] sm:$0xff] }
  0x81   : > { %4572 = vmatmul.mubr.msk.f32.gmra.mrb[22].mxu1 %vm211_vm1, %v5765_v7  ;;  %4798 = vmatmul.mubr.msk.f32.gmra.mrb[6].mxu0 %vm211_vm1, %v5657_v47  ;;  %v5793_v47 = vld [vmem:[%s5262_s22 + $0x140] sm:$0xff] }
  0x82   : > { %4574 = vmatprep.mubr.msk.f32.mxu1 %vm211_vm1, %v5768_v10  ;;  %4800 = vmatprep.mubr.msk.f32.mxu0 %vm211_vm1, %v5663_v43  ;;  %v5796_v43 = vld [vmem:[%s5262_s22 + $0x150] sm:$0xff] }
  0x85   : > { %4575 = vmatmul.mubr.msk.f32.gmra.mrb[24].mxu1 %vm211_vm1, %v5779_v57  ;;  %4801 = vmatmul.mubr.msk.f32.gmra.mrb[8].mxu0 %vm211_vm1, %v5677_v39  ;;  %v5807_v39 = vld [vmem:[%s5262_s22 + $0x158] sm:$0xff] }
  0x86   : > { %4577 = vmatprep.mubr.msk.f32.mxu1 %vm211_vm1, %v5782_v51  ;;  %4803 = vmatprep.mubr.msk.f32.mxu0 %vm211_vm1, %v5683_v35  ;;  %v5810_v35 = vld [vmem:[%s5262_s22 + $0x168] sm:$0xff] }
  0x89   : > { %4578 = vmatmul.mubr.msk.f32.gmra.mrb[26].mxu1 %vm211_vm1, %v5793_v47  ;;  %4804 = vmatmul.mubr.msk.f32.gmra.mrb[10].mxu0 %vm211_vm1, %v5697_v62  ;;  %v5821_v62 = vld [vmem:[%s5262_s22 + $0x170] sm:$0xff] }
  0x8a   : > { %4580 = vmatprep.mubr.msk.f32.mxu1 %vm211_vm1, %v5796_v43  ;;  %4806 = vmatprep.mubr.msk.f32.mxu0 %vm211_vm1, %v5703_v59 }
  0x8d   : > { %4581 = vmatmul.mubr.msk.f32.gmra.mrb[28].mxu1 %vm211_vm1, %v5807_v39  ;;  %4807 = vmatmul.mubr.msk.f32.gmra.mrb[12].mxu0 %vm211_vm1, %v5714_v33  ;;  %v862_v33 = vld [vmem:[%s5262_s22 + $0xa] sm:$0xff] }
  0x8e   : > { %4583 = vmatprep.mubr.msk.f32.mxu1 %vm211_vm1, %v5810_v35  ;;  %4809 = vmatprep.mubr.msk.f32.mxu0 %vm211_vm1, %v5717_v29 }
  0x91   : > { %4584 = vmatmul.mubr.msk.f32.gmra.mrb[30].mxu1 %vm211_vm1, %v5821_v62  ;;  %4810 = vmatmul.mubr.msk.f32.gmra.mrb[14].mxu0 %vm211_vm1, %v5733_v31 }
  0x92   : > { %4588 = vmatprep.mubr.msk.f32.mxu1 %vm211_vm1, %v861_v3  ;;  %4812 = vmatprep.mubr.msk.f32.mxu0 %vm211_vm1, %v5738_v0  ;;  %v6335_v3 = vld [vmem:[#allocation22_spill] sm:$0xff] }
  0x95   : > { %4589 = vmatmul.mubr.msk.f32.vlgmr.msra.gmra.mrb[0].mxu1 %vm211_vm1, %v862_v33  ;;  %4813 = vmatmul.mubr.msk.f32.gmra.mrb[16].mxu0 %vm211_vm1, %v5751_v28  ;;  %v4018_v33 = vld [vmem:[%s5262_s22 + $0x198] sm:$0xff] }
  0x96   : > { %4637 = vmatpush3.msk.msra.mxu1 %vm308_vm0, %v5563_v61  ;;  %4591 = vmatprep.mubr.msk.f32.mxu1 %vm211_vm1, %v5378_v24  ;;  %v5876_v24 = vld [vmem:[%s5262_s22 + $0x180] sm:$0xff] }
  0x97   : > { %4815 = vmatprep.mubr.msk.f32.mxu0 %vm211_vm1, %v5754_v5  ;;  %4936 = vmatprep.subr.msk.mxu1 %vm308_vm0, %v5240_v1  ;;  %v4019_v61 = vld [vmem:[%s5262_s22 + $0x1a0] sm:$0xff] }
  0x99   : > { %4592 = vmatmul.mubr.msk.f32.gmra.mrb[2].mxu1 %vm211_vm1, %v5389_v25  ;;  %4816 = vmatmul.mubr.msk.f32.gmra.mrb[18].mxu0 %vm211_vm1, %v5765_v7  ;;  %v5887_v25 = vld [vmem:[%s5262_s22 + $0x188] sm:$0xff] }
  0x9a   : > { %4594 = vmatprep.mubr.msk.f32.mxu1 %vm211_vm1, %v5395_v27  ;;  %4818 = vmatprep.mubr.msk.f32.mxu0 %vm211_vm1, %v5768_v10 }
  0x9d   : > { %4595 = vmatmul.mubr.msk.f32.gmra.mrb[4].mxu1 %vm211_vm1, %v5413_v30  ;;  %4819 = vmatmul.mubr.msk.f32.gmra.mrb[20].mxu0 %vm211_vm1, %v5779_v57 }
  0x9e   : > { %4597 = vmatprep.mubr.msk.f32.mxu1 %vm211_vm1, %v5421_v32  ;;  %4821 = vmatprep.mubr.msk.f32.mxu0 %vm211_vm1, %v5782_v51 }
  0xa1   : > { %4598 = vmatmul.mubr.msk.f32.gmra.mrb[6].mxu1 %vm211_vm1, %v5437_v34  ;;  %4822 = vmatmul.mubr.msk.f32.gmra.mrb[22].mxu0 %vm211_vm1, %v5793_v47 }
  0xa2   : > { %4600 = vmatprep.mubr.msk.f32.mxu1 %vm211_vm1, %v5443_v36  ;;  %4824 = vmatprep.mubr.msk.f32.mxu0 %vm211_vm1, %v5796_v43 }
  0xa5   : > { %4601 = vmatmul.mubr.msk.f32.gmra.mrb[8].mxu1 %vm211_vm1, %v5457_v38  ;;  %4825 = vmatmul.mubr.msk.f32.gmra.mrb[24].mxu0 %vm211_vm1, %v5807_v39 }
  0xa6   : > { %4603 = vmatprep.mubr.msk.f32.mxu1 %vm211_vm1, %v5463_v40  ;;  %4827 = vmatprep.mubr.msk.f32.mxu0 %vm211_vm1, %v5810_v35 }
  0xa9   : > { %4604 = vmatmul.mubr.msk.f32.gmra.mrb[10].mxu1 %vm211_vm1, %v5477_v42  ;;  %4828 = vmatmul.mubr.msk.f32.gmra.mrb[26].mxu0 %vm211_vm1, %v5821_v62 }
  0xaa   : > { %4606 = vmatprep.mubr.msk.f32.mxu1 %vm211_vm1, %v5483_v44  ;;  %4830 = vmatprep.mubr.msk.f32.mxu0 %vm211_vm1, %v5876_v24 }
  0xad   : > { %4607 = vmatmul.mubr.msk.f32.gmra.mrb[12].mxu1 %vm211_vm1, %v5497_v46  ;;  %4831 = vmatmul.mubr.msk.f32.gmra.mrb[28].mxu0 %vm211_vm1, %v5887_v25 }
  0xae   : > { %4609 = vmatprep.mubr.msk.f32.mxu1 %vm211_vm1, %v5503_v48  ;;  %4833 = vmatprep.mubr.msk.f32.mxu0 %vm211_vm1, %v4018_v33  ;;  %v6336_v33 = vld [vmem:[#allocation10_spill] sm:$0xff] }
  0xb1   : > { %4610 = vmatmul.mubr.msk.f32.gmra.mrb[14].mxu1 %vm211_vm1, %v5517_v50  ;;  %4834 = vmatmul.mubr.msk.f32.gmra.mrb[30].mxu0 %vm211_vm1, %v4019_v61  ;;  %v6337_v61 = vld [vmem:[#allocation23_spill] sm:$0xff] }
  0xb2   : > { %4612 = vmatprep.mubr.msk.f32.mxu1 %vm211_vm1, %v5523_v52  ;;  %4838 = vmatprep.mubr.msk.f32.mxu0 %vm211_vm1, %v5271_v8  ;;  %v6319_v8 = vld [vmem:[#allocation27_spill] sm:$0xff] }
  0xb5   : > { %4613 = vmatmul.mubr.msk.f32.gmra.mrb[16].mxu1 %vm211_vm1, %v5537_v54  ;;  %4839 = vmatmul.mubr.msk.f32.vlgmr.msra.gmra.mrb[0].mxu0 %vm211_vm1, %v5286_v11  ;;  %v6320_v11 = vld [vmem:[#allocation2_spill] sm:$0xff] }
  0xb6   : > { %4887 = vmatpush3.msk.msra.mxu0 %vm308_vm0, %v5722_v37  ;;  %4615 = vmatprep.mubr.msk.f32.mxu1 %vm211_vm1, %v5541_v56  ;;  %v6334_v37 = vld [vmem:[#allocation9_spill] sm:$0xff] }
  0xb7   : > { %4841 = vmatprep.mubr.msk.f32.mxu0 %vm211_vm1, %v5292_v12  ;;  %v6321_v12 = vld [vmem:[#allocation15_spill] sm:$0xff] }
  0xb9   : > { %4616 = vmatmul.mubr.msk.f32.gmra.mrb[18].mxu1 %vm211_vm1, %v5552_v58  ;;  %4842 = vmatmul.mubr.msk.f32.gmra.mrb[2].mxu0 %vm211_vm1, %v5305_v13  ;;  %v6322_v13 = vld [vmem:[#allocation3_spill] sm:$0xff] }
  0xba   : > { %4618 = vmatprep.mubr.msk.f32.mxu1 %vm211_vm1, %v5558_v60  ;;  %4844 = vmatprep.mubr.msk.f32.mxu0 %vm211_vm1, %v5308_v14  ;;  %v6323_v14 = vld [vmem:[#allocation16_spill] sm:$0xff] }
  0xbd   : > { %4619 = vmatmul.mubr.msk.f32.gmra.mrb[20].mxu1 %vm211_vm1, %v5576_v63  ;;  %4845 = vmatmul.mubr.msk.f32.gmra.mrb[4].mxu0 %vm211_vm1, %v5319_v15  ;;  %v6324_v15 = vld [vmem:[#allocation4_spill] sm:$0xff] }
  0xbe   : > { %4621 = vmatprep.mubr.msk.f32.mxu1 %vm211_vm1, %v5584_v2  ;;  %4847 = vmatprep.mubr.msk.f32.mxu0 %vm211_vm1, %v5322_v16  ;;  %v6325_v16 = vld [vmem:[#allocation17_spill] sm:$0xff] }
  0xc1   : > { %4622 = vmatmul.mubr.msk.f32.gmra.mrb[22].mxu1 %vm211_vm1, %v5600_v4  ;;  %4848 = vmatmul.mubr.msk.f32.gmra.mrb[6].mxu0 %vm211_vm1, %v5333_v17  ;;  %v6326_v17 = vld [vmem:[#allocation5_spill] sm:$0xff] }
  0xc2   : > { %4624 = vmatprep.mubr.msk.f32.mxu1 %vm211_vm1, %v5606_v6  ;;  %4850 = vmatprep.mubr.msk.f32.mxu0 %vm211_vm1, %v5336_v18  ;;  %v6327_v18 = vld [vmem:[#allocation18_spill] sm:$0xff] }
  0xc5   : > { %4625 = vmatmul.mubr.msk.f32.gmra.mrb[24].mxu1 %vm211_vm1, %v5620_v9  ;;  %4851 = vmatmul.mubr.msk.f32.gmra.mrb[8].mxu0 %vm211_vm1, %v5347_v19  ;;  %v6328_v19 = vld [vmem:[#allocation6_spill] sm:$0xff] }
  0xc6   : > { %4627 = vmatprep.mubr.msk.f32.mxu1 %vm211_vm1, %v5626_v55  ;;  %4853 = vmatprep.mubr.msk.f32.mxu0 %vm211_vm1, %v5350_v20  ;;  %v6329_v20 = vld [vmem:[#allocation19_spill] sm:$0xff] }
  0xc9   : > { %4628 = vmatmul.mubr.msk.f32.gmra.mrb[26].mxu1 %vm211_vm1, %v5640_v53  ;;  %4854 = vmatmul.mubr.msk.f32.gmra.mrb[10].mxu0 %vm211_vm1, %v5361_v21  ;;  %v6330_v21 = vld [vmem:[#allocation7_spill] sm:$0xff] }
  0xca   : > { %4630 = vmatprep.mubr.msk.f32.mxu1 %vm211_vm1, %v5646_v49  ;;  %4856 = vmatprep.mubr.msk.f32.mxu0 %vm211_vm1, %v5364_v22  ;;  %v6332_v22 = vld [vmem:[#allocation8_spill] sm:$0xff] }
  0xcd   : > { %4631 = vmatmul.mubr.msk.f32.gmra.mrb[28].mxu1 %vm211_vm1, %v5660_v45  ;;  %4857 = vmatmul.mubr.msk.f32.gmra.mrb[12].mxu0 %vm211_vm1, %v5375_v23  ;;  %v6333_v23 = vld [vmem:[#allocation21_spill] sm:$0xff] }
  0xce   : > { %4633 = vmatprep.mubr.msk.f32.mxu1 %vm211_vm1, %v5666_v41  ;;  %4859 = vmatprep.mubr.msk.f32.mxu0 %vm211_vm1, %v5392_v26 }
  0xd1   : > { %4634 = vmatmul.mubr.msk.f32.gmra.mrb[30].mxu1 %vm211_vm1, %v6319_v8  ;;  %4860 = vmatmul.mubr.msk.f32.gmra.mrb[14].mxu0 %vm211_vm1, %v6320_v11  ;;  %v6346_v8 = vld [vmem:[#allocation30_spill] sm:$0xff] }
  0xd2   : > { %4638 = vmatprep.mubr.msk.f32.mxu1 %vm211_vm1, %v6321_v12  ;;  %4862 = vmatprep.mubr.msk.f32.mxu0 %vm211_vm1, %v6322_v13  ;;  %v6338_v12 = vld [vmem:[#allocation11_spill] sm:$0xff] }
  0xd5   : > { %4639 = vmatmul.mubr.msk.f32.vlgmr.msra.gmra.mrb[0].mxu1 %vm211_vm1, %v6323_v14  ;;  %4863 = vmatmul.mubr.msk.f32.gmra.mrb[16].mxu0 %vm211_vm1, %v6324_v15  ;;  %v6339_v14 = vld [vmem:[#allocation24_spill] sm:$0xff] }
  0xd6   : > { %4937 = vmatpush3.msk.msra.mxu1 %vm308_vm0, %v5240_v1  ;;  %4641 = vmatprep.mubr.msk.f32.mxu1 %vm211_vm1, %v6325_v16  ;;  %v6331_v1 = vld [vmem:[#allocation20_spill] sm:$0xff] }
  0xd7   : > { %4865 = vmatprep.mubr.msk.f32.mxu0 %vm211_vm1, %v6326_v17  ;;  %v6340_v16 = vld [vmem:[#allocation12_spill] sm:$0xff] }
  0xd9   : > { %4642 = vmatmul.mubr.msk.f32.gmra.mrb[2].mxu1 %vm211_vm1, %v6327_v18  ;;  %4866 = vmatmul.mubr.msk.f32.gmra.mrb[18].mxu0 %vm211_vm1, %v6328_v19  ;;  %v6341_v18 = vld [vmem:[#allocation25_spill] sm:$0xff] }
  0xda   : > { %4644 = vmatprep.mubr.msk.f32.mxu1 %vm211_vm1, %v6329_v20  ;;  %4868 = vmatprep.mubr.msk.f32.mxu0 %vm211_vm1, %v6330_v21  ;;  %v6342_v20 = vld [vmem:[#allocation13_spill] sm:$0xff] }
  0xdd   : > { %4645 = vmatmul.mubr.msk.f32.gmra.mrb[4].mxu1 %vm211_vm1, %v6331_v1  ;;  %4869 = vmatmul.mubr.msk.f32.gmra.mrb[20].mxu0 %vm211_vm1, %v6332_v22  ;;  %v6014_v1 = vld [vmem:[%s5262_s22 + $0x181] sm:$0xff] }
  0xde   : > { %4647 = vmatprep.mubr.msk.f32.mxu1 %vm211_vm1, %v6333_v23  ;;  %4871 = vmatprep.mubr.msk.f32.mxu0 %vm211_vm1, %v6334_v37  ;;  %v6343_v23 = vld [vmem:[#allocation26_spill] sm:$0xff] }
  0xe1   : > { %4648 = vmatmul.mubr.msk.f32.gmra.mrb[6].mxu1 %vm211_vm1, %v6335_v3  ;;  %4872 = vmatmul.mubr.msk.f32.gmra.mrb[22].mxu0 %vm211_vm1, %v6336_v33  ;;  %v6344_v3 = vld [vmem:[#allocation14_spill] sm:$0xff] }
  0xe2   : > { %4650 = vmatprep.mubr.msk.f32.mxu1 %vm211_vm1, %v6337_v61  ;;  %4874 = vmatprep.mubr.msk.f32.mxu0 %vm211_vm1, %v6338_v12  ;;  %v6345_v61 = vld [vmem:[#allocation28_spill] sm:$0xff] }
  0xe5   : > { %4651 = vmatmul.mubr.msk.f32.gmra.mrb[8].mxu1 %vm211_vm1, %v6339_v14  ;;  %4875 = vmatmul.mubr.msk.f32.gmra.mrb[24].mxu0 %vm211_vm1, %v6340_v16  ;;  %v6025_v14 = vld [vmem:[%s5262_s22 + $0x189] sm:$0xff] }
  0xe6   : > { %4653 = vmatprep.mubr.msk.f32.mxu1 %vm211_vm1, %v6341_v18  ;;  %4877 = vmatprep.mubr.msk.f32.mxu0 %vm211_vm1, %v6342_v20  ;;  %v4084_v18 = vld [vmem:[%s5262_s22 + $0x199] sm:$0xff] }
  0xe9   : > { %4654 = vmatmul.mubr.msk.f32.gmra.mrb[10].mxu1 %vm211_vm1, %v6343_v23  ;;  %4878 = vmatmul.mubr.msk.f32.gmra.mrb[26].mxu0 %vm211_vm1, %v6344_v3  ;;  %v4085_v23 = vld [vmem:[%s5262_s22 + $0x1a1] sm:$0xff]  ;;  %v6347_v3 = vld [vmem:[#allocation32_spill] sm:$0xff] }
  0xea   : > { %4656 = vmatprep.mubr.msk.f32.mxu1 %vm211_vm1, %v6345_v61  ;;  %4880 = vmatprep.mubr.msk.f32.mxu0 %vm211_vm1, %v6014_v1 }
  0xed   : > { %4657 = vmatmul.mubr.msk.f32.gmra.mrb[12].mxu1 %vm211_vm1, %v6346_v8  ;;  %4881 = vmatmul.mubr.msk.f32.gmra.mrb[28].mxu0 %vm211_vm1, %v6025_v14 }
  0xee   : > { %4659 = vmatprep.mubr.msk.f32.mxu1 %vm211_vm1, %v5703_v59  ;;  %4883 = vmatprep.mubr.msk.f32.mxu0 %vm211_vm1, %v4084_v18 }
  0xf1   : > { %4660 = vmatmul.mubr.msk.f32.gmra.mrb[14].mxu1 %vm211_vm1, %v6347_v3  ;;  %4884 = vmatmul.mubr.msk.f32.gmra.mrb[30].mxu0 %vm211_vm1, %v4085_v23 }
  0xf2   : > { %4662 = vmatprep.mubr.msk.f32.mxu1 %vm211_vm1, %v5717_v29  ;;  %4888 = vmatprep.mubr.msk.f32.mxu0 %vm211_vm1, %v5395_v27  ;;  %v6349_v27 = vld [vmem:[#allocation29_spill] sm:$0xff] }
  0xf3   : > { %v4150_v29 = vld [vmem:[%s5262_s22 + $0x19a] sm:$0xff] }
  0xf5   : > { %4663 = vmatmul.mubr.msk.f32.gmra.mrb[16].mxu1 %vm211_vm1, %v5733_v31  ;;  %4889 = vmatmul.mubr.msk.f32.vlgmr.msra.gmra.mrb[0].mxu0 %vm211_vm1, %v5413_v30  ;;  %v6350_v30 = vld [vmem:[#allocation14_spill] sm:$0xff]  ;;  %v6351_v31 = vld [vmem:[#allocation31_spill] sm:$0xff] }
  0xf6   : > { %4665 = vmatprep.mubr.msk.f32.mxu1 %vm211_vm1, %v5738_v0  ;;  %4891 = vmatprep.mubr.msk.f32.mxu0 %vm211_vm1, %v5421_v32  ;;  %v4151_v32 = vld [vmem:[%s5262_s22 + $0x1a2] sm:$0xff] }
  0xf9   : > { %4666 = vmatmul.mubr.msk.f32.gmra.mrb[18].mxu1 %vm211_vm1, %v5751_v28  ;;  %4892 = vmatmul.mubr.msk.f32.gmra.mrb[2].mxu0 %vm211_vm1, %v5437_v34 }
  0xfa   : > { %4668 = vmatprep.mubr.msk.f32.mxu1 %vm211_vm1, %v5754_v5  ;;  %4894 = vmatprep.mubr.msk.f32.mxu0 %vm211_vm1, %v5443_v36 }
  0xfd   : > { %4669 = vmatmul.mubr.msk.f32.gmra.mrb[20].mxu1 %vm211_vm1, %v5765_v7  ;;  %4895 = vmatmul.mubr.msk.f32.gmra.mrb[4].mxu0 %vm211_vm1, %v5457_v38 }
  0xfe   : > { %4671 = vmatprep.mubr.msk.f32.mxu1 %vm211_vm1, %v5768_v10  ;;  %4897 = vmatprep.mubr.msk.f32.mxu0 %vm211_vm1, %v5463_v40 }
 0x101   : > { %4672 = vmatmul.mubr.msk.f32.gmra.mrb[22].mxu1 %vm211_vm1, %v5779_v57  ;;  %4898 = vmatmul.mubr.msk.f32.gmra.mrb[6].mxu0 %vm211_vm1, %v5477_v42 }
 0x102   : > { %4674 = vmatprep.mubr.msk.f32.mxu1 %vm211_vm1, %v5782_v51  ;;  %4900 = vmatprep.mubr.msk.f32.mxu0 %vm211_vm1, %v5483_v44 }
 0x105   : > { %4675 = vmatmul.mubr.msk.f32.gmra.mrb[24].mxu1 %vm211_vm1, %v5793_v47  ;;  %4901 = vmatmul.mubr.msk.f32.gmra.mrb[8].mxu0 %vm211_vm1, %v5497_v46 }
 0x106   : > { %4677 = vmatprep.mubr.msk.f32.mxu1 %vm211_vm1, %v5796_v43  ;;  %4903 = vmatprep.mubr.msk.f32.mxu0 %vm211_vm1, %v5503_v48 }
 0x109   : > { %4678 = vmatmul.mubr.msk.f32.gmra.mrb[26].mxu1 %vm211_vm1, %v5807_v39  ;;  %4904 = vmatmul.mubr.msk.f32.gmra.mrb[10].mxu0 %vm211_vm1, %v5517_v50 }
 0x10a   : > { %4680 = vmatprep.mubr.msk.f32.mxu1 %vm211_vm1, %v5810_v35  ;;  %4906 = vmatprep.mubr.msk.f32.mxu0 %vm211_vm1, %v5523_v52 }
 0x10d   : > { %4681 = vmatmul.mubr.msk.f32.gmra.mrb[28].mxu1 %vm211_vm1, %v5821_v62  ;;  %4907 = vmatmul.mubr.msk.f32.gmra.mrb[12].mxu0 %vm211_vm1, %v5537_v54 }
 0x10e   : > { %4683 = vmatprep.mubr.msk.f32.mxu1 %vm211_vm1, %v5876_v24  ;;  %4909 = vmatprep.mubr.msk.f32.mxu0 %vm211_vm1, %v5541_v56 }
 0x111   : > { %4684 = vmatmul.mubr.msk.f32.gmra.mrb[30].mxu1 %vm211_vm1, %v5887_v25  ;;  %4910 = vmatmul.mubr.msk.f32.gmra.mrb[14].mxu0 %vm211_vm1, %v5552_v58 }
 0x112   : > { %4712 = vmatprep.mubr.msk.f32.mxu1 %vm211_vm1, %v5392_v26  ;;  %4912 = vmatprep.mubr.msk.f32.mxu0 %vm211_vm1, %v5558_v60  ;;  %v6348_v26 = vld [vmem:[#allocation27_spill] sm:$0xff] }
 0x115   : > { %4713 = vmatmul.mubr.msk.f32.vlgmr.msra.gmra.mrb[16].mxu1 %vm211_vm1, %v6320_v11  ;;  %4913 = vmatmul.mubr.msk.f32.gmra.mrb[16].mxu0 %vm211_vm1, %v5576_v63 }
 0x116   : > { %4715 = vmatprep.mubr.msk.f32.mxu1 %vm211_vm1, %v6322_v13  ;;  %4915 = vmatprep.mubr.msk.f32.mxu0 %vm211_vm1, %v5584_v2 }
 0x119   : > { %4716 = vmatmul.mubr.msk.f32.gmra.mrb[18].mxu1 %vm211_vm1, %v6324_v15  ;;  %4916 = vmatmul.mubr.msk.f32.gmra.mrb[18].mxu0 %vm211_vm1, %v5600_v4 }
 0x11a   : > { %4718 = vmatprep.mubr.msk.f32.mxu1 %vm211_vm1, %v6326_v17  ;;  %4918 = vmatprep.mubr.msk.f32.mxu0 %vm211_vm1, %v5606_v6 }
 0x11d   : > { %4719 = vmatmul.mubr.msk.f32.gmra.mrb[20].mxu1 %vm211_vm1, %v6328_v19  ;;  %4919 = vmatmul.mubr.msk.f32.gmra.mrb[20].mxu0 %vm211_vm1, %v5620_v9 }
 0x11e   : > { %4721 = vmatprep.mubr.msk.f32.mxu1 %vm211_vm1, %v6330_v21  ;;  %4921 = vmatprep.mubr.msk.f32.mxu0 %vm211_vm1, %v5626_v55 }
 0x121   : > { %4722 = vmatmul.mubr.msk.f32.gmra.mrb[22].mxu1 %vm211_vm1, %v6332_v22  ;;  %4922 = vmatmul.mubr.msk.f32.gmra.mrb[22].mxu0 %vm211_vm1, %v5640_v53 }
 0x122   : > { %4724 = vmatprep.mubr.msk.f32.mxu1 %vm211_vm1, %v6334_v37  ;;  %4924 = vmatprep.mubr.msk.f32.mxu0 %vm211_vm1, %v5646_v49 }
 0x125   : > { %4725 = vmatmul.mubr.msk.f32.gmra.mrb[24].mxu1 %vm211_vm1, %v6336_v33  ;;  %4925 = vmatmul.mubr.msk.f32.gmra.mrb[24].mxu0 %vm211_vm1, %v5660_v45 }
 0x126   : > { %4727 = vmatprep.mubr.msk.f32.mxu1 %vm211_vm1, %v6338_v12  ;;  %4927 = vmatprep.mubr.msk.f32.mxu0 %vm211_vm1, %v5666_v41 }
 0x129   : > { %4728 = vmatmul.mubr.msk.f32.gmra.mrb[26].mxu1 %vm211_vm1, %v6340_v16  ;;  %4928 = vmatmul.mubr.msk.f32.gmra.mrb[26].mxu0 %vm211_vm1, %v6348_v26 }
 0x12a   : > { %4730 = vmatprep.mubr.msk.f32.mxu1 %vm211_vm1, %v6342_v20  ;;  %4930 = vmatprep.mubr.msk.f32.mxu0 %vm211_vm1, %v6349_v27 }
 0x12d   : > { %4731 = vmatmul.mubr.msk.f32.gmra.mrb[28].mxu1 %vm211_vm1, %v6350_v30  ;;  %4931 = vmatmul.mubr.msk.f32.gmra.mrb[28].mxu0 %vm211_vm1, %v6351_v31 }
 0x12e   : > { %4733 = vmatprep.mubr.msk.f32.mxu1 %vm211_vm1, %v6014_v1  ;;  %4933 = vmatprep.mubr.msk.f32.mxu0 %vm211_vm1, %v4150_v29 }
 0x131   : > { %4734 = vmatmul.mubr.msk.f32.gmra.mrb[30].mxu1 %vm211_vm1, %v6025_v14  ;;  %4934 = vmatmul.mubr.msk.f32.gmra.mrb[30].mxu0 %vm211_vm1, %v4151_v32 }
 0x1a8   : > { %v4640_v34 = vpop.f32.mrb[0].mxu1 }
 0x1a9   : > { %v1451_v35 = vpop.f32.mrb[1].mxu1 }
 0x1ac   : > { %v4643_v36 = vpop.f32.mrb[2].mxu1 }
 0x1ad   : > { %v1461_v38 = vpop.f32.mrb[3].mxu1 }
 0x1b0   : > { %v4646_v39 = vpop.f32.mrb[4].mxu1 }
 0x1b1   : > { %v1471_v40 = vpop.f32.mrb[5].mxu1 }
 0x1b4   : > { %v4649_v41 = vpop.f32.mrb[6].mxu1 }
 0x1b5   : > { %v1481_v42 = vpop.f32.mrb[7].mxu1 }
 0x1b8   : > { %v4652_v43 = vpop.f32.mrb[8].mxu1 }
 0x1b9   : > { %v1491_v44 = vpop.f32.mrb[9].mxu1 }
 0x1bc   : > { %v4655_v45 = vpop.f32.mrb[10].mxu1 }
 0x1bd   : > { %v1501_v46 = vpop.f32.mrb[11].mxu1 }
 0x1c0   : > { %v4658_v47 = vpop.f32.mrb[12].mxu1 }
 0x1c1   : > { %v1511_v48 = vpop.f32.mrb[13].mxu1 }
 0x1c4   : > { %v4661_v49 = vpop.f32.mrb[14].mxu1 }
 0x1c5   : > { %v1521_v50 = vpop.f32.mrb[15].mxu1 }
 0x1c8   : > { %v4890_v51 = vpop.f32.mrb[0].mxu0 }
 0x1c9   : > { %v4938_v52 = vadd.f32 %v4890_v51, %v4640_v34  ;;  %v3402_v53 = vpop.f32.mrb[1].mxu0 }
 0x1ca   : > { %v4939_v54 = vadd.f32 %v3402_v53, %v1451_v35 }
 0x1cb   : > { %3595 = vst.msk [vmem:[%s6171_s8 + $0x8] sm:$0xff] %vm3593_vm2, %v4938_v52 }
 0x1cc   : > { %3594 = vst.msk [vmem:[%s6171_s8] sm:$0xff] %vm3593_vm2, %v4939_v54  ;;  %v4893_v56 = vpop.f32.mrb[2].mxu0 }
 0x1cd   : > { %v4940_v58 = vadd.f32 %v4893_v56, %v4643_v36  ;;  %v3412_v59 = vpop.f32.mrb[3].mxu0 }
 0x1ce   : > { %v4941_v60 = vadd.f32 %v3412_v59, %v1461_v38 }
 0x1cf   : > { %3597 = vst.msk [vmem:[%s6171_s8 + $0x18] sm:$0xff] %vm3593_vm2, %v4940_v58 }
 0x1d0   : > { %3596 = vst.msk [vmem:[%s6171_s8 + $0x10] sm:$0xff] %vm3593_vm2, %v4941_v60  ;;  %v4896_v62 = vpop.f32.mrb[4].mxu0 }
 0x1d1   : > { %v4942_v63 = vadd.f32 %v4896_v62, %v4646_v39  ;;  %v3422_v0 = vpop.f32.mrb[5].mxu0 }
 0x1d2   : > { %v4943_v2 = vadd.f32 %v3422_v0, %v1471_v40 }
 0x1d3   : > { %3599 = vst.msk [vmem:[%s6171_s8 + $0x28] sm:$0xff] %vm3593_vm2, %v4942_v63 }
 0x1d4   : > { %3598 = vst.msk [vmem:[%s6171_s8 + $0x20] sm:$0xff] %vm3593_vm2, %v4943_v2  ;;  %v4899_v4 = vpop.f32.mrb[6].mxu0 }
 0x1d5   : > { %v4944_v5 = vadd.f32 %v4899_v4, %v4649_v41  ;;  %v3432_v6 = vpop.f32.mrb[7].mxu0 }
 0x1d6   : > { %v4945_v7 = vadd.f32 %v3432_v6, %v1481_v42 }
 0x1d7   : > { %3601 = vst.msk [vmem:[%s6171_s8 + $0x38] sm:$0xff] %vm3593_vm2, %v4944_v5 }
 0x1d8   : > { %3600 = vst.msk [vmem:[%s6171_s8 + $0x30] sm:$0xff] %vm3593_vm2, %v4945_v7  ;;  %v4902_v9 = vpop.f32.mrb[8].mxu0 }
 0x1d9   : > { %v4946_v10 = vadd.f32 %v4902_v9, %v4652_v43  ;;  %v3442_v55 = vpop.f32.mrb[9].mxu0 }
 0x1da   : > { %v4947_v57 = vadd.f32 %v3442_v55, %v1491_v44 }
 0x1db   : > { %3603 = vst.msk [vmem:[%s6171_s8 + $0x48] sm:$0xff] %vm3593_vm2, %v4946_v10 }
 0x1dc   : > { %3602 = vst.msk [vmem:[%s6171_s8 + $0x40] sm:$0xff] %vm3593_vm2, %v4947_v57  ;;  %v4905_v28 = vpop.f32.mrb[10].mxu0 }
 0x1dd   : > { %v4948_v24 = vadd.f32 %v4905_v28, %v4655_v45  ;;  %v3452_v25 = vpop.f32.mrb[11].mxu0 }
 0x1de   : > { %v4949_v8 = vadd.f32 %v3452_v25, %v1501_v46 }
 0x1df   : > { %3605 = vst.msk [vmem:[%s6171_s8 + $0x58] sm:$0xff] %vm3593_vm2, %v4948_v24 }
 0x1e0   : > { %3604 = vst.msk [vmem:[%s6171_s8 + $0x50] sm:$0xff] %vm3593_vm2, %v4949_v8  ;;  %v4908_v11 = vpop.f32.mrb[12].mxu0 }
 0x1e1   : > { %v4950_v13 = vadd.f32 %v4908_v11, %v4658_v47  ;;  %v3462_v15 = vpop.f32.mrb[13].mxu0 }
 0x1e2   : > { %v4951_v17 = vadd.f32 %v3462_v15, %v1511_v48 }
 0x1e3   : > { %3607 = vst.msk [vmem:[%s6171_s8 + $0x68] sm:$0xff] %vm3593_vm2, %v4950_v13 }
 0x1e4   : > { %3606 = vst.msk [vmem:[%s6171_s8 + $0x60] sm:$0xff] %vm3593_vm2, %v4951_v17  ;;  %v4911_v19 = vpop.f32.mrb[14].mxu0 }
 0x1e5   : > { %v4952_v21 = vadd.f32 %v4911_v19, %v4661_v49  ;;  %v3472_v22 = vpop.f32.mrb[15].mxu0 }
 0x1e6   : > { %v4953_v37 = vadd.f32 %v3472_v22, %v1521_v50 }
 0x1e7   : > { %3609 = vst.msk [vmem:[%s6171_s8 + $0x78] sm:$0xff] %vm3593_vm2, %v4952_v21 }
 0x1e8   : > { %3608 = vst.msk [vmem:[%s6171_s8 + $0x70] sm:$0xff] %vm3593_vm2, %v4953_v37  ;;  %v4714_v33 = vpop.f32.mrb[16].mxu1  ;;  %v4914_v12 = vpop.f32.mrb[16].mxu0 }
 0x1e9   : > { %v4954_v16 = vadd.f32 %v4914_v12, %v4714_v33  ;;  %v1921_v20 = vpop.f32.mrb[17].mxu1  ;;  %v3482_v1 = vpop.f32.mrb[17].mxu0 }
 0x1ea   : > { %v4955_v3 = vadd.f32 %v3482_v1, %v1921_v20 }
 0x1eb   : > { %3611 = vst.msk [vmem:[%s6171_s8 + $0x88] sm:$0xff] %vm3593_vm2, %v4954_v16 }
 0x1ec   : > { %3610 = vst.msk [vmem:[%s6171_s8 + $0x80] sm:$0xff] %vm3593_vm2, %v4955_v3  ;;  %v4717_v61 = vpop.f32.mrb[18].mxu1  ;;  %v4917_v14 = vpop.f32.mrb[18].mxu0 }
 0x1ed   : > { %v4956_v18 = vadd.f32 %v4917_v14, %v4717_v61  ;;  %v1931_v23 = vpop.f32.mrb[19].mxu1  ;;  %v3492_v26 = vpop.f32.mrb[19].mxu0 }
 0x1ee   : > { %v4957_v27 = vadd.f32 %v3492_v26, %v1931_v23 }
 0x1ef   : > { %3613 = vst.msk [vmem:[%s6171_s8 + $0x98] sm:$0xff] %vm3593_vm2, %v4956_v18 }
 0x1f0   : > { %3612 = vst.msk [vmem:[%s6171_s8 + $0x90] sm:$0xff] %vm3593_vm2, %v4957_v27  ;;  %v4720_v29 = vpop.f32.mrb[20].mxu1  ;;  %v4920_v30 = vpop.f32.mrb[20].mxu0 }
 0x1f1   : > { %v4958_v31 = vadd.f32 %v4920_v30, %v4720_v29  ;;  %v1941_v32 = vpop.f32.mrb[21].mxu1  ;;  %v3502_v34 = vpop.f32.mrb[21].mxu0 }
 0x1f2   : > { %v4959_v35 = vadd.f32 %v3502_v34, %v1941_v32 }
 0x1f3   : > { %3615 = vst.msk [vmem:[%s6171_s8 + $0xa8] sm:$0xff] %vm3593_vm2, %v4958_v31 }
 0x1f4   : > { %3614 = vst.msk [vmem:[%s6171_s8 + $0xa0] sm:$0xff] %vm3593_vm2, %v4959_v35  ;;  %v4723_v36 = vpop.f32.mrb[22].mxu1  ;;  %v4923_v38 = vpop.f32.mrb[22].mxu0 }
 0x1f5   : > { %v4960_v39 = vadd.f32 %v4923_v38, %v4723_v36  ;;  %v1951_v40 = vpop.f32.mrb[23].mxu1  ;;  %v3512_v41 = vpop.f32.mrb[23].mxu0 }
 0x1f6   : > { %v4961_v42 = vadd.f32 %v3512_v41, %v1951_v40 }
 0x1f7   : > { %3617 = vst.msk [vmem:[%s6171_s8 + $0xb8] sm:$0xff] %vm3593_vm2, %v4960_v39 }
 0x1f8   : > { %3616 = vst.msk [vmem:[%s6171_s8 + $0xb0] sm:$0xff] %vm3593_vm2, %v4961_v42  ;;  %v4726_v43 = vpop.f32.mrb[24].mxu1  ;;  %v4926_v44 = vpop.f32.mrb[24].mxu0 }
 0x1f9   : > { %v4962_v45 = vadd.f32 %v4926_v44, %v4726_v43  ;;  %v1961_v46 = vpop.f32.mrb[25].mxu1  ;;  %v3522_v47 = vpop.f32.mrb[25].mxu0 }
 0x1fa   : > { %v4963_v48 = vadd.f32 %v3522_v47, %v1961_v46 }
 0x1fb   : > { %3619 = vst.msk [vmem:[%s6171_s8 + $0xc8] sm:$0xff] %vm3593_vm2, %v4962_v45 }
 0x1fc   : > { %3618 = vst.msk [vmem:[%s6171_s8 + $0xc0] sm:$0xff] %vm3593_vm2, %v4963_v48  ;;  %v4729_v49 = vpop.f32.mrb[26].mxu1  ;;  %v4929_v50 = vpop.f32.mrb[26].mxu0 }
 0x1fd   : > { %v4964_v51 = vadd.f32 %v4929_v50, %v4729_v49  ;;  %v1971_v52 = vpop.f32.mrb[27].mxu1  ;;  %v3532_v53 = vpop.f32.mrb[27].mxu0 }
 0x1fe   : > { %v4965_v54 = vadd.f32 %v3532_v53, %v1971_v52 }
 0x1ff   : > { %3621 = vst.msk [vmem:[%s6171_s8 + $0xd8] sm:$0xff] %vm3593_vm2, %v4964_v51 }
 0x200   : > { %3620 = vst.msk [vmem:[%s6171_s8 + $0xd0] sm:$0xff] %vm3593_vm2, %v4965_v54  ;;  %v4732_v56 = vpop.f32.mrb[28].mxu1  ;;  %v4932_v58 = vpop.f32.mrb[28].mxu0 }
 0x201   : > { %v4966_v59 = vadd.f32 %v4932_v58, %v4732_v56  ;;  %v1981_v60 = vpop.f32.mrb[29].mxu1  ;;  %v3542_v62 = vpop.f32.mrb[29].mxu0 }
 0x202   : > { %v4967_v63 = vadd.f32 %v3542_v62, %v1981_v60 }
 0x203   : > { %3623 = vst.msk [vmem:[%s6171_s8 + $0xe8] sm:$0xff] %vm3593_vm2, %v4966_v59 }
 0x204   : > { %3622 = vst.msk [vmem:[%s6171_s8 + $0xe0] sm:$0xff] %vm3593_vm2, %v4967_v63  ;;  %v4735_v0 = vpop.f32.mrb[30].mxu1  ;;  %v4935_v2 = vpop.f32.mrb[30].mxu0 }
 0x205   : > { %v4968_v4 = vadd.f32 %v4935_v2, %v4735_v0  ;;  %v1991_v5 = vpop.f32.mrb[31].mxu1  ;;  %v3552_v6 = vpop.f32.mrb[31].mxu0 }
 0x206   : > { %v4969_v7 = vadd.f32 %v3552_v6, %v1991_v5 }
 0x207   : > { %3625 = vst.msk [vmem:[%s6171_s8 + $0xf8] sm:$0xff] %vm3593_vm2, %v4968_v4 }
 0x208   : > { %3624 = vst.msk [vmem:[%s6171_s8 + $0xf0] sm:$0xff] %vm3593_vm2, %v4969_v7 }
 0x209 PF: > { %s12_s9 = sadd.s32 1, %s5209_s9  }
 0x20a   : > { %p9_p4 = scmp.ge.s32.totalorder %s12_s9, 4  }
 0x20c   :  { %11 = sbr.rel (!%p9_p4) target bundleno = 1 (0x1), region = 68 }

</bundles_post_ra>
